<compile_context>
chip_gen: v7x
topology: tpu7x:2x2x1
jax: 0.10.0
libtpu: 0.0.40
codegen_flags: <defaults>
</compile_context>

<pallas_src>
import jax
import jax.numpy as jnp
from jax.experimental import pallas as pl
from jax.experimental.pallas import tpu as pltpu


# ----------------------------------------------------------------------------
# Model dimensions (small, synthetic)
# ----------------------------------------------------------------------------
B = 2            # batch
S = 8            # sequence length
H = 128          # hidden size
E = 4            # number of experts
F = 128          # expert FFN dim
V = 64           # vocab size
T = B * S        # flattened tokens (16)
TT = 8           # token tile (>= 8 sublanes; use 128-256 at real T)
EP = 128         # router width padded to a full lane tile (lane-dense gates)
EF = E * F       # concatenated expert FFN width (512)
NEG_INF = -1e30  # finite "-inf" for padded router columns (exp -> exactly 0)


# ----------------------------------------------------------------------------
# Single fused kernel: base projection + router softmax + dense-MoE combine
# ----------------------------------------------------------------------------
def fused_moe_kernel(x_ref, mask_ref, wb_ref, bb_ref, wr_ref, br_ref,
                     w1_ref, b1_ref, w2_ref, b2_ref,
                     out_ref, gates_ref, hid_ref):
    # ---- base model projection: h = tanh(x @ Wb + bb) ----------------------
    x = x_ref[...]                                              # (TT, H) bf16
    h_f32 = jnp.tanh(
        jnp.dot(x, wb_ref[...], preferred_element_type=jnp.float32)
        + bb_ref[...])                                          # (TT, H) f32
    hid_ref[...] = h_f32                                        # base hidden
    h = h_f32.astype(jnp.bfloat16)

    # ---- router: logits over EP lanes (cols >= E carry -1e30 bias -> prob 0)
    logits = jnp.dot(h, wr_ref[...], preferred_element_type=jnp.float32)
    logits = logits + br_ref[...]                               # (TT, EP)
    m = jnp.max(logits, axis=-1, keepdims=True)
    p = jnp.exp(logits - m)
    gates = p / jnp.sum(p, axis=-1, keepdims=True)              # exact softmax
    gates_ref[...] = gates                                      # (TT, EP) f32

    # ---- experts: two wide matmuls + static lane-slice gating ---------------
    # a = relu(h @ W1_concat + b1_concat)                       (TT, E*F) f32
    hh = jnp.dot(h, w1_ref[...], preferred_element_type=jnp.float32)
    hh = jnp.maximum(hh + b1_ref[...], 0.0)

    # gate each expert's activation slab; F == 128 so every slice is a
    # lane-tile-aligned view, and the (TT,1) gate broadcast is cheap VPU work.
    gated = jnp.concatenate(
        [hh[:, e * F:(e + 1) * F] * gates[:, e:e + 1] for e in range(E)],
        axis=-1).astype(jnp.bfloat16)                           # (TT, E*F)

    # sum_e gates_e * (a_e @ W2_e)      -- single wide bf16 MXU matmul
    moe = jnp.dot(gated, w2_ref[...], preferred_element_type=jnp.float32)

    # fold the per-expert output bias: sum_e gates_e * b2_e  (E broadcasts)
    for e in range(E):
        moe = moe + gates[:, e:e + 1] * b2_ref[e:e + 1, :]

    # padded tokens pass the base hidden state through unchanged
    mask = mask_ref[...]                                        # (TT, 1)
    out_ref[...] = jnp.where(mask > 0.0, moe, h_f32)


def adaptive_moe_pallas(x_bf16, mask_f32, p):
    tok = lambda shape: pl.BlockSpec(shape, lambda i: (i, 0))   # token-tiled
    fix = lambda shape: pl.BlockSpec(shape, lambda i: (0, 0))   # grid-invariant

    flops = 2 * T * H * (H + EP + EF) + 2 * T * EF * H
    transcendentals = T * (H + EP)
    bytes_accessed = (
        T * H * 2 + T * 4                       # x (bf16), mask (f32)
        + H * H * 2 + H * 4                     # Wb, bb
        + H * EP * 2 + EP * 4                   # Wr, br (padded)
        + H * EF * 2 + EF * 4                   # W1c, b1c
        + EF * H * 2 + E * H * 4                # W2c, b2
        + 2 * T * H * 4 + T * EP * 4)           # out, hid, gates (f32)

    return pl.pallas_call(
        fused_moe_kernel,
        out_shape=(
            jax.ShapeDtypeStruct((T, H), jnp.float32),    # mixed hidden states
            jax.ShapeDtypeStruct((T, EP), jnp.float32),   # router probs (padded)
            jax.ShapeDtypeStruct((T, H), jnp.float32),    # base hidden states
        ),
        grid=(pl.cdiv(T, TT),),
        in_specs=[
            tok((TT, H)),      # x (bf16)
            tok((TT, 1)),      # attention mask (f32)
            fix((H, H)),       # Wb (bf16)
            fix((1, H)),       # bb (f32)
            fix((H, EP)),      # router weight, lane-padded (bf16)
            fix((1, EP)),      # router bias, lane-padded (f32)
            fix((H, EF)),      # expert W1 concatenated (bf16)
            fix((1, EF)),      # expert b1 concatenated (f32)
            fix((EF, H)),      # expert W2 stacked (bf16)
            fix((E, H)),       # expert b2 stacked (f32)
        ],
        out_specs=(tok((TT, H)), tok((TT, EP)), tok((TT, H))),
        compiler_params=pltpu.CompilerParams(
            dimension_semantics=("parallel",)),
        cost_estimate=pl.CostEstimate(
            flops=flops, transcendentals=transcendentals,
            bytes_accessed=bytes_accessed),
    )(x_bf16, mask_f32, p["wb"], p["bb"], p["wr_pad"], p["br_pad"],
      p["w1c"], p["b1c"], p["w2c"], p["b2e"])


# ----------------------------------------------------------------------------
# AdaptiveMoE.forward equivalent
# ----------------------------------------------------------------------------
def adaptive_moe_forward(params, input_ids, attention_mask):
    # TODO(synk): real HF base LM / tokenizer / generate() / save_pretrained()
    # have no Pallas equivalent; the base model is a synthetic embedding +
    # dense+tanh projection computed inside the fused kernel.
    emb = jnp.take(params["embed_bf16"], input_ids, axis=0)     # (B, S, H) bf16 gather
    x = emb.reshape(T, H)
    mask = attention_mask.reshape(T, 1).astype(jnp.float32)

    out, gates_pad, hidden = adaptive_moe_pallas(x, mask, params)

    last_hidden_state = out.reshape(B, S, H)
    router_probs = gates_pad[:, :E].reshape(B, S, E)
    return {
        "last_hidden_state": last_hidden_state,
        "router_outputs": {
            "hidden_states": last_hidden_state,
            "router_probs": router_probs,
        },
        "base_outputs": {"hidden_states": hidden.reshape(B, S, H)},
    }


# ----------------------------------------------------------------------------
# Deterministic parameter init (synthetic; kernel-ready layouts precomputed)
# ----------------------------------------------------------------------------
def init_params(key):
    ks = jax.random.split(key, 6)
    scale = 0.02
    embed = scale * jax.random.normal(ks[0], (V, H), jnp.float32)
    wb = scale * jax.random.normal(ks[1], (H, H), jnp.float32)
    bb = jnp.zeros((1, H), jnp.float32)
    wr = scale * jax.random.normal(ks[2], (H, E), jnp.float32)
    br = jnp.zeros((1, E), jnp.float32)
    w1 = scale * jax.random.normal(ks[3], (E, H, F), jnp.float32)
    b1 = jnp.zeros((E, 1, F), jnp.float32)
    w2 = scale * jax.random.normal(ks[4], (E, F, H), jnp.float32)
    b2 = jnp.zeros((E, 1, H), jnp.float32)

    # kernel-ready layouts (one-time host-side layout plumbing)
    wr_pad = jnp.zeros((H, EP), jnp.float32).at[:, :E].set(wr)
    br_pad = jnp.full((1, EP), NEG_INF, jnp.float32).at[:, :E].set(br)
    w1c = jnp.transpose(w1, (1, 0, 2)).reshape(H, EF)   # [:, e*F:(e+1)*F] = W1[e]
    b1c = b1.reshape(1, EF)
    w2c = w2.reshape(EF, H)                             # [e*F:(e+1)*F, :] = W2[e]
    b2e = b2.reshape(E, H)

    return {
        # f32 originals (used by the pure-JAX reference check)
        "embed": embed,
        "wb_f32": wb, "bb": bb, "wr": wr, "br": br,
        "w1": w1, "b1": b1, "w2": w2, "b2": b2,
        # bf16 embedding table -> gather emits bf16 directly (no f32 round trip)
        "embed_bf16": embed.astype(jnp.bfloat16),
        # bf16 weights for the MXU, f32 biases
        "wb": wb.astype(jnp.bfloat16),
        "wr_pad": wr_pad.astype(jnp.bfloat16),
        "br_pad": br_pad,
        "w1c": w1c.astype(jnp.bfloat16),
        "b1c": b1c,
        "w2c": w2c.astype(jnp.bfloat16),
        "b2e": b2e,
    }


# ----------------------------------------------------------------------------
# Pure-JAX reference (f32) for correctness checking
# ----------------------------------------------------------------------------
def reference_forward(params, input_ids, attention_mask):
    emb = jnp.take(params["embed"], input_ids, axis=0).reshape(T, H)
    h = jnp.tanh(emb @ params["wb_f32"] + params["bb"])
    logits = h @ params["wr"] + params["br"]
    gates = jax.nn.softmax(logits, axis=-1)
    acc = jnp.zeros((T, H), jnp.float32)
    for e in range(E):
        a = jnp.maximum(h @ params["w1"][e] + params["b1"][e], 0.0)
        acc = acc + gates[:, e:e + 1] * (a @ params["w2"][e] + params["b2"][e])
    mask = attention_mask.reshape(T, 1).astype(jnp.float32)
    out = jnp.where(mask > 0.0, acc, h)
    return out, gates, h


if __name__ == "__main__":
    key = jax.random.PRNGKey(0)
    params = init_params(key)

    input_ids = jax.random.randint(jax.random.PRNGKey(1), (B, S), 0, V)
    attention_mask = jnp.ones((B, S), jnp.int32).at[1, S - 2:].set(0)  # pad tail

    out = adaptive_moe_forward(params, input_ids, attention_mask)
    jax.block_until_ready(out["last_hidden_state"])
    jax.block_until_ready(out["router_outputs"]["router_probs"])

    probs = out["router_outputs"]["router_probs"]
    assert out["last_hidden_state"].shape == (B, S, H)
    assert probs.shape == (B, S, E)
    assert jnp.allclose(probs.sum(-1), 1.0, atol=1e-3)

    # compare against pure-JAX f32 reference (bf16 matmuls -> loose-ish atol;
    # the dominant error term is the bf16 `h` feeding the router/experts)
    ref_out, ref_gates, ref_h = reference_forward(params, input_ids, attention_mask)
    assert jnp.allclose(out["last_hidden_state"].reshape(T, H), ref_out, atol=5e-3)
    assert jnp.allclose(probs.reshape(T, E), ref_gates, atol=5e-3)
    assert jnp.allclose(out["base_outputs"]["hidden_states"].reshape(T, H),
                        ref_h, atol=5e-3)

    print("KERNEL_OK")
</pallas_src>

<mosaic_0001>
module attributes {stable_mosaic.version = 11 : i64} {
  func.func @fused_moe_kernel(%arg0: i32, %arg1: memref<8x128xbf16, #tpu.memory_space<vmem>>, %arg2: memref<8x1xf32, #tpu.memory_space<vmem>>, %arg3: memref<128x128xbf16, #tpu.memory_space<vmem>>, %arg4: memref<1x128xf32, #tpu.memory_space<vmem>>, %arg5: memref<128x128xbf16, #tpu.memory_space<vmem>>, %arg6: memref<1x128xf32, #tpu.memory_space<vmem>>, %arg7: memref<128x512xbf16, #tpu.memory_space<vmem>>, %arg8: memref<1x512xf32, #tpu.memory_space<vmem>>, %arg9: memref<512x128xbf16, #tpu.memory_space<vmem>>, %arg10: memref<4x128xf32, #tpu.memory_space<vmem>>, %arg11: memref<8x128xf32, #tpu.memory_space<vmem>>, %arg12: memref<8x128xf32, #tpu.memory_space<vmem>>, %arg13: memref<8x128xf32, #tpu.memory_space<vmem>>) attributes {dimension_semantics = [#tpu.dimension_semantics<parallel>], iteration_bounds = array<i64: 2>, scalar_prefetch = 0 : i64, scratch_operands = 0 : i64, tpu.core_type = #tpu.core_type<tc>, window_params = [{transform_indices = @transform_0, window_bounds = array<i64: 8, 128>}, {transform_indices = @transform_1, window_bounds = array<i64: 8, 1>}, {pipeline_mode = #tpu.pipeline_mode<synchronous>, transform_indices = @transform_2, window_bounds = array<i64: 128, 128>}, {pipeline_mode = #tpu.pipeline_mode<synchronous>, transform_indices = @transform_3, window_bounds = array<i64: 1, 128>}, {pipeline_mode = #tpu.pipeline_mode<synchronous>, transform_indices = @transform_4, window_bounds = array<i64: 128, 128>}, {pipeline_mode = #tpu.pipeline_mode<synchronous>, transform_indices = @transform_5, window_bounds = array<i64: 1, 128>}, {pipeline_mode = #tpu.pipeline_mode<synchronous>, transform_indices = @transform_6, window_bounds = array<i64: 128, 512>}, {pipeline_mode = #tpu.pipeline_mode<synchronous>, transform_indices = @transform_7, window_bounds = array<i64: 1, 512>}, {pipeline_mode = #tpu.pipeline_mode<synchronous>, transform_indices = @transform_8, window_bounds = array<i64: 512, 128>}, {pipeline_mode = #tpu.pipeline_mode<synchronous>, transform_indices = @transform_9, window_bounds = array<i64: 4, 128>}, {transform_indices = @transform_10, window_bounds = array<i64: 8, 128>}, {transform_indices = @transform_11, window_bounds = array<i64: 8, 128>}, {transform_indices = @transform_12, window_bounds = array<i64: 8, 128>}]} {
    %c0 = arith.constant 0 : index
    %c0_0 = arith.constant 0 : index
    %0 = vector.load %arg1[%c0, %c0_0] : memref<8x128xbf16, #tpu.memory_space<vmem>>, vector<8x128xbf16>
    %c0_1 = arith.constant 0 : index
    %c0_2 = arith.constant 0 : index
    %1 = vector.load %arg3[%c0_1, %c0_2] : memref<128x128xbf16, #tpu.memory_space<vmem>>, vector<128x128xbf16>
    %cst = arith.constant dense<0.000000e+00> : vector<8x128xf32>
    %2 = tpu.matmul %0, %1, %cst {dimension_numbers = #tpu.dot_dimension_numbers<[1], [0], [0], [1], [0, 0, 1, 1], [], []>} : vector<8x128xbf16>, vector<128x128xbf16>, vector<8x128xf32> -> vector<8x128xf32>
    %c0_3 = arith.constant 0 : index
    %c0_4 = arith.constant 0 : index
    %3 = vector.load %arg4[%c0_3, %c0_4] : memref<1x128xf32, #tpu.memory_space<vmem>>, vector<1x128xf32>
    %4 = vector.broadcast %3 : vector<1x128xf32> to vector<8x128xf32>
    %5 = arith.addf %2, %4 : vector<8x128xf32>
    %6 = math.tanh %5 : vector<8x128xf32>
    %c0_5 = arith.constant 0 : index
    %c0_6 = arith.constant 0 : index
    %7 = vector.load %arg13[%c0_5, %c0_6] : memref<8x128xf32, #tpu.memory_space<vmem>>, vector<8x128xf32>
    tpu.vector_store %arg13[%c0_5, %c0_6], %6 {strides = array<i32>} : memref<8x128xf32, #tpu.memory_space<vmem>>, vector<8x128xf32>,
    %8 = arith.truncf %6 : vector<8x128xf32> to vector<8x128xbf16>
    %c0_7 = arith.constant 0 : index
    %c0_8 = arith.constant 0 : index
    %9 = vector.load %arg5[%c0_7, %c0_8] : memref<128x128xbf16, #tpu.memory_space<vmem>>, vector<128x128xbf16>
    %cst_9 = arith.constant dense<0.000000e+00> : vector<8x128xf32>
    %10 = tpu.matmul %8, %9, %cst_9 {dimension_numbers = #tpu.dot_dimension_numbers<[1], [0], [0], [1], [0, 0, 1, 1], [], []>} : vector<8x128xbf16>, vector<128x128xbf16>, vector<8x128xf32> -> vector<8x128xf32>
    %c0_10 = arith.constant 0 : index
    %c0_11 = arith.constant 0 : index
    %11 = vector.load %arg6[%c0_10, %c0_11] : memref<1x128xf32, #tpu.memory_space<vmem>>, vector<1x128xf32>
    %12 = vector.broadcast %11 : vector<1x128xf32> to vector<8x128xf32>
    %13 = arith.addf %10, %12 : vector<8x128xf32>
    %cst_12 = arith.constant dense<0xFF800000> : vector<8xf32>
    %14 = vector.multi_reduction <maximumf>, %13, %cst_12 [1] : vector<8x128xf32> to vector<8xf32>
    %15 = vector.shape_cast %14 : vector<8xf32> to vector<8x1xf32>
    %16 = vector.broadcast %15 : vector<8x1xf32> to vector<8x128xf32>
    %17 = arith.subf %13, %16 : vector<8x128xf32>
    %18 = math.exp %17 : vector<8x128xf32>
    %cst_13 = arith.constant dense<0.000000e+00> : vector<8xf32>
    %19 = vector.multi_reduction <add>, %18, %cst_13 [1] : vector<8x128xf32> to vector<8xf32>
    %20 = vector.shape_cast %19 : vector<8xf32> to vector<8x1xf32>
    %21 = vector.broadcast %20 : vector<8x1xf32> to vector<8x128xf32>
    %22 = arith.divf %18, %21 : vector<8x128xf32>
    %c0_14 = arith.constant 0 : index
    %c0_15 = arith.constant 0 : index
    %23 = vector.load %arg12[%c0_14, %c0_15] : memref<8x128xf32, #tpu.memory_space<vmem>>, vector<8x128xf32>
    tpu.vector_store %arg12[%c0_14, %c0_15], %22 {strides = array<i32>} : memref<8x128xf32, #tpu.memory_space<vmem>>, vector<8x128xf32>,
    %c0_16 = arith.constant 0 : index
    %c0_17 = arith.constant 0 : index
    %24 = vector.load %arg7[%c0_16, %c0_17] : memref<128x512xbf16, #tpu.memory_space<vmem>>, vector<128x512xbf16>
    %cst_18 = arith.constant dense<0.000000e+00> : vector<8x512xf32>
    %25 = tpu.matmul %8, %24, %cst_18 {dimension_numbers = #tpu.dot_dimension_numbers<[1], [0], [0], [1], [0, 0, 1, 1], [], []>} : vector<8x128xbf16>, vector<128x512xbf16>, vector<8x512xf32> -> vector<8x512xf32>
    %c0_19 = arith.constant 0 : index
    %c0_20 = arith.constant 0 : index
    %26 = vector.load %arg8[%c0_19, %c0_20] : memref<1x512xf32, #tpu.memory_space<vmem>>, vector<1x512xf32>
    %27 = vector.broadcast %26 : vector<1x512xf32> to vector<8x512xf32>
    %28 = arith.addf %25, %27 : vector<8x512xf32>
    %cst_21 = arith.constant 0.000000e+00 : f32
    %29 = vector.broadcast %cst_21 : f32 to vector<8x512xf32>
    %30 = arith.maximumf %28, %29 : vector<8x512xf32>
    %31 = vector.extract_strided_slice %30 {offsets = [0, 0], sizes = [8, 128], strides = [1, 1]} : vector<8x512xf32> to vector<8x128xf32>
    %32 = vector.extract_strided_slice %22 {offsets = [0, 0], sizes = [8, 1], strides = [1, 1]} : vector<8x128xf32> to vector<8x1xf32>
    %33 = vector.broadcast %32 : vector<8x1xf32> to vector<8x128xf32>
    %34 = arith.mulf %31, %33 : vector<8x128xf32>
    %35 = vector.extract_strided_slice %30 {offsets = [0, 128], sizes = [8, 128], strides = [1, 1]} : vector<8x512xf32> to vector<8x128xf32>
    %36 = vector.extract_strided_slice %22 {offsets = [0, 1], sizes = [8, 1], strides = [1, 1]} : vector<8x128xf32> to vector<8x1xf32>
    %37 = vector.broadcast %36 : vector<8x1xf32> to vector<8x128xf32>
    %38 = arith.mulf %35, %37 : vector<8x128xf32>
    %39 = vector.extract_strided_slice %30 {offsets = [0, 256], sizes = [8, 128], strides = [1, 1]} : vector<8x512xf32> to vector<8x128xf32>
    %40 = vector.extract_strided_slice %22 {offsets = [0, 2], sizes = [8, 1], strides = [1, 1]} : vector<8x128xf32> to vector<8x1xf32>
    %41 = vector.broadcast %40 : vector<8x1xf32> to vector<8x128xf32>
    %42 = arith.mulf %39, %41 : vector<8x128xf32>
    %43 = vector.extract_strided_slice %30 {offsets = [0, 384], sizes = [8, 128], strides = [1, 1]} : vector<8x512xf32> to vector<8x128xf32>
    %44 = vector.extract_strided_slice %22 {offsets = [0, 3], sizes = [8, 1], strides = [1, 1]} : vector<8x128xf32> to vector<8x1xf32>
    %45 = vector.broadcast %44 : vector<8x1xf32> to vector<8x128xf32>
    %46 = arith.mulf %43, %45 : vector<8x128xf32>
    %47 = tpu.concatenate %34, %38, %42, %46 in 1 : vector<8x128xf32>, vector<8x128xf32>, vector<8x128xf32>, vector<8x128xf32> -> vector<8x512xf32>
    %48 = arith.truncf %47 : vector<8x512xf32> to vector<8x512xbf16>
    %c0_22 = arith.constant 0 : index
    %c0_23 = arith.constant 0 : index
    %49 = vector.load %arg9[%c0_22, %c0_23] : memref<512x128xbf16, #tpu.memory_space<vmem>>, vector<512x128xbf16>
    %cst_24 = arith.constant dense<0.000000e+00> : vector<8x128xf32>
    %50 = tpu.matmul %48, %49, %cst_24 {dimension_numbers = #tpu.dot_dimension_numbers<[1], [0], [0], [1], [0, 0, 1, 1], [], []>} : vector<8x512xbf16>, vector<512x128xbf16>, vector<8x128xf32> -> vector<8x128xf32>
    %51 = vector.extract_strided_slice %22 {offsets = [0, 0], sizes = [8, 1], strides = [1, 1]} : vector<8x128xf32> to vector<8x1xf32>
    %c0_25 = arith.constant 0 : index
    %c0_26 = arith.constant 0 : index
    %52 = vector.load %arg10[%c0_25, %c0_26] : memref<4x128xf32, #tpu.memory_space<vmem>>, vector<1x128xf32>
    %53 = vector.broadcast %51 : vector<8x1xf32> to vector<8x128xf32>
    %54 = vector.broadcast %52 : vector<1x128xf32> to vector<8x128xf32>
    %55 = arith.mulf %53, %54 : vector<8x128xf32>
    %56 = arith.addf %50, %55 : vector<8x128xf32>
    %57 = vector.extract_strided_slice %22 {offsets = [0, 1], sizes = [8, 1], strides = [1, 1]} : vector<8x128xf32> to vector<8x1xf32>
    %c1 = arith.constant 1 : index
    %c0_27 = arith.constant 0 : index
    %58 = vector.load %arg10[%c1, %c0_27] : memref<4x128xf32, #tpu.memory_space<vmem>>, vector<1x128xf32>
    %59 = vector.broadcast %57 : vector<8x1xf32> to vector<8x128xf32>
    %60 = vector.broadcast %58 : vector<1x128xf32> to vector<8x128xf32>
    %61 = arith.mulf %59, %60 : vector<8x128xf32>
    %62 = arith.addf %56, %61 : vector<8x128xf32>
    %63 = vector.extract_strided_slice %22 {offsets = [0, 2], sizes = [8, 1], strides = [1, 1]} : vector<8x128xf32> to vector<8x1xf32>
    %c2 = arith.constant 2 : index
    %c0_28 = arith.constant 0 : index
    %64 = vector.load %arg10[%c2, %c0_28] : memref<4x128xf32, #tpu.memory_space<vmem>>, vector<1x128xf32>
    %65 = vector.broadcast %63 : vector<8x1xf32> to vector<8x128xf32>
    %66 = vector.broadcast %64 : vector<1x128xf32> to vector<8x128xf32>
    %67 = arith.mulf %65, %66 : vector<8x128xf32>
    %68 = arith.addf %62, %67 : vector<8x128xf32>
    %69 = vector.extract_strided_slice %22 {offsets = [0, 3], sizes = [8, 1], strides = [1, 1]} : vector<8x128xf32> to vector<8x1xf32>
    %c3 = arith.constant 3 : index
    %c0_29 = arith.constant 0 : index
    %70 = vector.load %arg10[%c3, %c0_29] : memref<4x128xf32, #tpu.memory_space<vmem>>, vector<1x128xf32>
    %71 = vector.broadcast %69 : vector<8x1xf32> to vector<8x128xf32>
    %72 = vector.broadcast %70 : vector<1x128xf32> to vector<8x128xf32>
    %73 = arith.mulf %71, %72 : vector<8x128xf32>
    %74 = arith.addf %68, %73 : vector<8x128xf32>
    %c0_30 = arith.constant 0 : index
    %c0_31 = arith.constant 0 : index
    %75 = vector.load %arg2[%c0_30, %c0_31] : memref<8x1xf32, #tpu.memory_space<vmem>>, vector<8x1xf32>
    %cst_32 = arith.constant 0.000000e+00 : f32
    %76 = vector.broadcast %cst_32 : f32 to vector<8x1xf32>
    %77 = arith.cmpf ogt, %75, %76 : vector<8x1xf32>
    %78 = vector.shape_cast %77 : vector<8x1xi1> to vector<8x1xi1>
    %79 = vector.broadcast %78 : vector<8x1xi1> to vector<8x128xi1>
    %80 = arith.select %79, %74, %6 : vector<8x128xi1>, vector<8x128xf32>
    %c0_33 = arith.constant 0 : index
    %c0_34 = arith.constant 0 : index
    %81 = vector.load %arg11[%c0_33, %c0_34] : memref<8x128xf32, #tpu.memory_space<vmem>>, vector<8x128xf32>
    tpu.vector_store %arg11[%c0_33, %c0_34], %80 {strides = array<i32>} : memref<8x128xf32, #tpu.memory_space<vmem>>, vector<8x128xf32>,
    return
  }
  func.func @transform_0(%arg0: i32) -> (i32, i32) {
    %c0_i32 = arith.constant 0 : i32
    %c0_i32_0 = arith.constant 0 : i32
    return %arg0, %c0_i32 : i32, i32
  }
  func.func @transform_1(%arg0: i32) -> (i32, i32) {
    %c0_i32 = arith.constant 0 : i32
    %c0_i32_0 = arith.constant 0 : i32
    return %arg0, %c0_i32 : i32, i32
  }
  func.func @transform_2(%arg0: i32) -> (i32, i32) {
    %c0_i32 = arith.constant 0 : i32
    %c0_i32_0 = arith.constant 0 : i32
    %c0_i32_1 = arith.constant 0 : i32
    return %c0_i32, %c0_i32_0 : i32, i32
  }
  func.func @transform_3(%arg0: i32) -> (i32, i32) {
    %c0_i32 = arith.constant 0 : i32
    %c0_i32_0 = arith.constant 0 : i32
    %c0_i32_1 = arith.constant 0 : i32
    return %c0_i32, %c0_i32_0 : i32, i32
  }
  func.func @transform_4(%arg0: i32) -> (i32, i32) {
    %c0_i32 = arith.constant 0 : i32
    %c0_i32_0 = arith.constant 0 : i32
    %c0_i32_1 = arith.constant 0 : i32
    return %c0_i32, %c0_i32_0 : i32, i32
  }
  func.func @transform_5(%arg0: i32) -> (i32, i32) {
    %c0_i32 = arith.constant 0 : i32
    %c0_i32_0 = arith.constant 0 : i32
    %c0_i32_1 = arith.constant 0 : i32
    return %c0_i32, %c0_i32_0 : i32, i32
  }
  func.func @transform_6(%arg0: i32) -> (i32, i32) {
    %c0_i32 = arith.constant 0 : i32
    %c0_i32_0 = arith.constant 0 : i32
    %c0_i32_1 = arith.constant 0 : i32
    return %c0_i32, %c0_i32_0 : i32, i32
  }
  func.func @transform_7(%arg0: i32) -> (i32, i32) {
    %c0_i32 = arith.constant 0 : i32
    %c0_i32_0 = arith.constant 0 : i32
    %c0_i32_1 = arith.constant 0 : i32
    return %c0_i32, %c0_i32_0 : i32, i32
  }
  func.func @transform_8(%arg0: i32) -> (i32, i32) {
    %c0_i32 = arith.constant 0 : i32
    %c0_i32_0 = arith.constant 0 : i32
    %c0_i32_1 = arith.constant 0 : i32
    return %c0_i32, %c0_i32_0 : i32, i32
  }
  func.func @transform_9(%arg0: i32) -> (i32, i32) {
    %c0_i32 = arith.constant 0 : i32
    %c0_i32_0 = arith.constant 0 : i32
    %c0_i32_1 = arith.constant 0 : i32
    return %c0_i32, %c0_i32_0 : i32, i32
  }
  func.func @transform_10(%arg0: i32) -> (i32, i32) {
    %c0_i32 = arith.constant 0 : i32
    %c0_i32_0 = arith.constant 0 : i32
    return %arg0, %c0_i32 : i32, i32
  }
  func.func @transform_11(%arg0: i32) -> (i32, i32) {
    %c0_i32 = arith.constant 0 : i32
    %c0_i32_0 = arith.constant 0 : i32
    return %arg0, %c0_i32 : i32, i32
  }
  func.func @transform_12(%arg0: i32) -> (i32, i32) {
    %c0_i32 = arith.constant 0 : i32
    %c0_i32_0 = arith.constant 0 : i32
    return %arg0, %c0_i32 : i32, i32
  }
}

</mosaic_0001>

<bundles_post_ra>
// kernel: tpu_custom_call.1
= control target key start
LH: loop header
LB: loop body
LE: loop exit
PB: predicated region body
PF: predicated region fallthrough
CT: control target
= control target key end

     0   :  { %s2803_s0 = inlined_call_operand.vmem [shape: bf16[16,128], index: 0, kind: input, shape index: {}]   ;;  %s2804_s1 = inlined_call_operand.vmem [shape: f32[16,1], index: 1, kind: input, shape index: {}]   ;;  %s2805_s2 = inlined_call_operand.hbm [shape: bf16[128,128], index: 2, kind: input, shape index: {}]   ;;  %s2806_s3 = inlined_call_operand.vmem [shape: f32[1,128], index: 3, kind: input, shape index: {}]   ;;  %s2807_s4 = inlined_call_operand.hbm [shape: bf16[128,128], index: 4, kind: input, shape index: {}]   ;;  %s2808_s5 = inlined_call_operand.vmem [shape: f32[1,128], index: 5, kind: input, shape index: {}]   ;;  %s2809_s6 = inlined_call_operand.hbm [shape: bf16[128,512], index: 6, kind: input, shape index: {}]   ;;  %s2810_s7 = inlined_call_operand.vmem [shape: f32[1,512], index: 7, kind: input, shape index: {}]   ;;  %s2811_s8 = inlined_call_operand.hbm [shape: bf16[512,128], index: 8, kind: input, shape index: {}]   ;;  %s2812_s9 = inlined_call_operand.vmem [shape: f32[4,128], index: 9, kind: input, shape index: {}]   ;;  %s2813_s10 = inlined_call_operand.hbm [shape: f32[16,128], index: 10, kind: output, shape index: {0}]   ;;  %s2814_s11 = inlined_call_operand.hbm [shape: f32[16,128], index: 11, kind: output, shape index: {1}]   ;;  %s2815_s12 = inlined_call_operand.hbm [shape: f32[16,128], index: 12, kind: output, shape index: {2}]  }
   0x1   :  { %2831 = sst [smem:[#allocation25_spill]] %s2812_s9 }
   0x2   :  { %2832 = sst [smem:[#allocation26_spill]] %s2813_s10 }
   0x3   :  { %18 = vsyncpa [#allocation3], 0 }
   0x4   :  { %19 = vsyncpa [#allocation6], 0 }
   0x5   :  { %20 = vsyncpa [#allocation9], 0 }
   0x6   :  { %21 = vsyncpa [#allocation4], 0 }
   0x7   :  { %23 = vsyncpa [#allocation4 + $0x1], 0 }
   0x8   :  { %24 = vsyncpa [#allocation12], 0 }
   0x9   :  { %26 = vsyncpa [#allocation12 + $0x1], 0  ;;  %s2411_s21 = smov 0   ;;  %s2413_s22 = smov 0  }
   0xa   :  { %s2415_s23 = smov 0   ;;  %s2417_s24 = smov 0  }
   0xb LB: > { %2833 = sst [smem:[#allocation19_spill]] %s2315_s21  ;;  %s2432_s25 = sadd.s32 4294967295, %s2327_s24   ;;  %s2327_s24 = sphi %s2417_s24, %s2861_s24   ;;  %s2323_s23 = sphi %s2415_s23, %s2863_s23   ;;  %s2319_s22 = sphi %s2413_s22, %s2865_s22   ;;  %s2315_s21 = sphi %s2411_s21, %s2864_s21  }
   0xc   : > { %2834 = sst [smem:[#allocation20_spill]] %s2323_s23  ;;  %s2816_s26 = sadd.s32 4294967294, %s2327_s24  }
   0xd   : > { %2835 = sst [smem:[#allocation21_spill]] %s2327_s24  ;;  %s2436_s27 = sadd.s32 1, %s2327_s24  }
   0xe   : > { %2836 = sst [smem:[#allocation22_spill]] %s2436_s27  ;;  %s259_s28 = sadd.s32 1, %s2323_s23 }
   0xf   : > { %s256_s29 = ssub.s32 %s2327_s24, %s2436_s27  ;;  %p269_p0 = scmp.ne.s32.totalorder %s2323_s23, %s2319_s22 }
  0x10   : > { %p257_p1 = scmp.eq.s32.totalorder %s256_s29, 0  ;;  %p270_p2 = scmp.eq.s32.totalorder %s2432_s25, 1 }
  0x11   : > { %p275_p3 = scmp.ne.s32.totalorder %s2319_s22, %s2315_s21  ;;  %p276_p4 = scmp.eq.s32.totalorder %s2816_s26, 1 }
  0x12   : > { %s2449_s30 = scalar_select %p257_p1, %s2323_s23, %s259_s28  }
  0x13   : > { %p2451_p5 = por %p270_p2, %p269_p0  ;;  %p2455_p6 = por %p276_p4, %p275_p3 }
  0x14   : > { %2837 = sst [smem:[#allocation23_spill]] %s2449_s30  ;;  %p1661_p7 = scmp.ge.s32.totalorder %s2327_s24, 1 }
  0x15   : > { %s2838_s13 = scalar_select %p2451_p5, 1, 0 }
  0x16   : > { %s2839_s14 = scalar_select %p2455_p6, 1, 0 }
  0x17   : > { %p335_p8 = scmp.lt.s32.totalorder %s2327_s24, 3  ;;  %p2821_p9 = scmp.eq.s32.totalorder %s2432_s25, 0 }
  0x18   : > { %2840 = sst [smem:[#allocation24_spill]] %s2839_s14  ;;  %s2329_s16 = smov [#allocation5]  }
  0x19   : > { %p2462_p10 = pnand %p1661_p7, %p335_p8  ;;  %s363_s17 = sshll.u32 %s2329_s16, 4  ;;  %s2468_s17 = int_to_ptr.vmem [resolvable:$true] %s363_s17 }
  0x1a   : > { %s2330_s19 = smov [#allocation2]   ;;  %s2331_s28 = smov [#allocation7]  }
  0x1b   : > { %s2841_s15 = scalar_select %p2462_p10, 1, 0 }
  0x1c   : > { %p1895_p11 = pneg %p2462_p10  ;;  %s347_s20 = sshll.u32 %s2330_s19, 4  ;;  %s2476_s20 = int_to_ptr.vmem [resolvable:$true] %s347_s20 }
  0x1d   : > { %s2478_s29 = sshll.u32 %s2331_s28, 4  ;;  %s2081_s23 = scalar_lea.hbm %s2807_s4, 1024  ;;  %s380_s29 = int_to_ptr.vmem [resolvable:$true] %s2478_s29 }
  0x1e   : > { %p2472_p12 = pnand %p2821_p9, %p1895_p11  ;;  %p2082_p13 = scmp.ne.s32.totalorder %s2807_s4, %s2081_s23 }
  0x1f   : > { %p2088_p3 = scmp.lt.u32.totalorder %s2081_s23, %s2807_s4 }
  0x20   : > { %p2488_p0 = pneg %p2472_p12 }
  0x22   : > { %p2084_p1 = pnand %p2488_p0, %p2082_p13 }
  0x24   : > { %p2085_p2 = pneg %p2084_p1 }
  0x26   : > { %p2090_p4 = pnand %p2088_p3, %p2085_p2 }
  0x28   : > { %2093 = shalt.err (!%p2090_p4)
}
  0x29   : > { %s2094_s26 = scalar_lea.vmem %s2468_s17, 1024  ;;  %p2102_p9 = scmp.lt.s32.totalorder %s2468_s17, %s2468_s17 }
  0x2a   : > { %p2095_p7 = scmp.ne.s32.totalorder %s2468_s17, %s2094_s26  ;;  %p2103_p6 = scmp.lt.s32.totalorder %s2094_s26, %s2094_s26 }
  0x2c   : > { %p2097_p8 = pnand %p2095_p7, %p2488_p0  ;;  %p2104_p13 = por %p2103_p6, %p2102_p9 }
  0x2e   : > { %p2098_p11 = pneg %p2097_p8 }
  0x30   : > { %p2105_p1 = pnand %p2104_p13, %p2098_p11 }
  0x32   : > { %2108 = shalt.err (!%p2105_p1)
}
  0x33   : > { %s2829_s27 = smov 64   ;;  %s2830_s23 = smov 4  }
  0x34   : > { %1901 = dma.hbm_to_vmem [thread:$0]  (!%p2472_p12), %s2807_s4, 1024, %s2468_s17, [#allocation6], %s2829_s27, %s2829_s27, %s2830_s23  }
  0x35   : > { %s2109_s26 = scalar_lea.hbm %s2805_s2, 1024 }
  0x36   : > { %p2110_p6 = scmp.ne.s32.totalorder %s2805_s2, %s2109_s26  ;;  %p2116_p3 = scmp.lt.u32.totalorder %s2109_s26, %s2805_s2 }
  0x38   : > { %p2112_p9 = pnand %p2110_p6, %p2488_p0 }
  0x3a   : > { %p2113_p2 = pneg %p2112_p9 }
  0x3c   : > { %p2118_p4 = pnand %p2116_p3, %p2113_p2 }
  0x3e   : > { %2121 = shalt.err (!%p2118_p4)
}
  0x3f   : > { %s2122_s17 = scalar_lea.vmem %s2476_s20, 1024  ;;  %p2130_p13 = scmp.lt.s32.totalorder %s2476_s20, %s2476_s20 }
  0x40   : > { %p2123_p7 = scmp.ne.s32.totalorder %s2476_s20, %s2122_s17  ;;  %p2131_p1 = scmp.lt.s32.totalorder %s2122_s17, %s2122_s17 }
  0x42   : > { %p2125_p8 = pnand %p2123_p7, %p2488_p0  ;;  %p2132_p6 = por %p2131_p1, %p2130_p13 }
  0x44   : > { %p2126_p11 = pneg %p2125_p8 }
  0x46   : > { %p2133_p9 = pnand %p2132_p6, %p2126_p11 }
  0x48   : > { %2136 = shalt.err (!%p2133_p9)
}
  0x49   : > { %1898 = dma.hbm_to_vmem [thread:$0]  (!%p2472_p12), %s2805_s2, 1024, %s2476_s20, [#allocation3], %s2829_s27, %s2829_s27, %s2830_s23  }
  0x4a   : > { %s2137_s30 = scalar_lea.hbm %s2809_s6, 4096 }
  0x4b   : > { %p2138_p2 = scmp.ne.s32.totalorder %s2809_s6, %s2137_s30  ;;  %p2144_p7 = scmp.lt.u32.totalorder %s2137_s30, %s2809_s6 }
  0x4d   : > { %p2140_p3 = pnand %p2138_p2, %p2488_p0 }
  0x4f   : > { %p2141_p4 = pneg %p2140_p3 }
  0x51   : > { %p2146_p8 = pnand %p2144_p7, %p2141_p4 }
  0x53   : > { %2149 = shalt.err (!%p2146_p8)
}
  0x54   : > { %s2150_s17 = scalar_lea.vmem %s380_s29, 4096  ;;  %p2158_p6 = scmp.lt.s32.totalorder %s380_s29, %s380_s29 }
  0x55   : > { %p2151_p11 = scmp.ne.s32.totalorder %s380_s29, %s2150_s17  ;;  %p2159_p9 = scmp.lt.s32.totalorder %s2150_s17, %s2150_s17 }
  0x57   : > { %p2153_p13 = pnand %p2151_p11, %p2488_p0  ;;  %p2160_p5 = por %p2159_p9, %p2158_p6 }
  0x59   : > { %p2154_p1 = pneg %p2153_p13 }
  0x5b   : > { %p2161_p10 = pnand %p2160_p5, %p2154_p1 }
  0x5d   : > { %2164 = shalt.err (!%p2161_p10)
}
  0x5e   : > { %s2334_s20 = smov 256   ;;  %s2335_s9 = smov 16  }
  0x5f   : > { %1904 = dma.hbm_to_vmem [thread:$0]  (!%p2472_p12), %s2809_s6, 4096, %s380_s29, [#allocation6], %s2334_s20, %s2334_s20, %s2335_s9  }
  0x60   : > { %s2336_s24 = smov [#allocation8]   ;;  %s2165_s28 = scalar_lea.hbm %s2811_s8, 4096 }
  0x61   : > { %s395_s30 = sshll.u32 %s2336_s24, 4  ;;  %p2166_p5 = scmp.ne.s32.totalorder %s2811_s8, %s2165_s28  ;;  %s396_s30 = int_to_ptr.vmem [resolvable:$true] %s395_s30 }
  0x62   : > { %p2172_p3 = scmp.lt.u32.totalorder %s2165_s28, %s2811_s8 }
  0x63   : > { %p2168_p10 = pnand %p2166_p5, %p2488_p0 }
  0x65   : > { %p2169_p2 = pneg %p2168_p10 }
  0x67   : > { %p2174_p4 = pnand %p2172_p3, %p2169_p2 }
  0x69   : > { %2177 = shalt.err (!%p2174_p4)
}
  0x6a   : > { %s2178_s29 = scalar_lea.vmem %s396_s30, 4096  ;;  %p2186_p13 = scmp.lt.s32.totalorder %s396_s30, %s396_s30 }
  0x6b   : > { %p2179_p7 = scmp.ne.s32.totalorder %s396_s30, %s2178_s29  ;;  %p2187_p1 = scmp.lt.s32.totalorder %s2178_s29, %s2178_s29 }
  0x6d   : > { %p2181_p8 = pnand %p2179_p7, %p2488_p0  ;;  %p2188_p6 = por %p2187_p1, %p2186_p13 }
  0x6f   : > { %p2182_p11 = pneg %p2181_p8 }
  0x71   : > { %p2189_p9 = pnand %p2188_p6, %p2182_p11 }
  0x73   : > { %2192 = shalt.err (!%p2189_p9)
}
  0x74   : > { %s2844_s20 = smov 4   ;;  %s2845_s9 = smov 64  }
  0x75   : > { %1907 = dma.hbm_to_vmem [thread:$0]  (!%p2472_p12), %s2811_s8, 4096, %s396_s30, [#allocation9], %s2845_s9, %s2845_s9, %s2844_s20  }
  0x76   : > { %p2846_p5 = scmp.ne.s32.totalorder %s2841_s15, 0 }
  0x77   : > { %p2847_p0 = scmp.eq.s32.totalorder (!%p2846_p5), %s2432_s25, 0 }
  0x78   : > { %428 = sbr.rel (%p2846_p5) target bundleno = 1301 (0x515), region = 60 }
  0x7f   : > { %2294 = dma.done.wait (%p2847_p0), [#allocation3], 1024   ;;  %p2848_p10 = pmov %p2847_p0 }
  0x80   : > { %p2849_p2 = pmov %p2847_p0 }
  0x81   : > { %2296 = vsyncadd (%p2848_p10), [#allocation3], 4294966272 }
  0x82   : > { %2298 = dma.done.wait (%p2849_p2), [#allocation6], 5120   ;;  %p2850_p3 = pmov %p2847_p0 }
  0x83   : > { %p2851_p4 = pmov %p2847_p0 }
  0x84   : > { %2300 = vsyncadd (%p2850_p3), [#allocation6], 4294962176 }
  0x85   : > { %2302 = dma.done.wait (%p2851_p4), [#allocation9], 4096   ;;  %p2852_p12 = pmov %p2847_p0 }
  0x86   : > { %v2337_v0 = vmov 0.0   ;;  %vm2338_vm0 = vmmov 0   ;;  %v1979_v1 = vld [vmem:[#allocation2] sm:$0xff]   ;;  %v1980_v2 = vld [vmem:[#allocation2 + $0x8] sm:$0xff]   ;;  %v1981_v3 = vld [vmem:[#allocation2 + $0x10] sm:$0xff]   ;;  %p495_p7 = scmp.lt.s32.totalorder %s2432_s25, 1 }
  0x87   : > { %2304 = vsyncadd (%p2852_p12), [#allocation9], 4294963200  ;;  %1833 = vmatprep.subr.bf16.mxu0 %v2337_v0  ;;  %1849 = vmatprep.mubr.msk.bf16.mxu0 %vm2338_vm0, %v2337_v0  ;;  %v1987_v4 = vld [vmem:[#allocation5] sm:$0xff]   ;;  %v1982_v5 = vld [vmem:[#allocation2 + $0x18] sm:$0xff]   ;;  %v2339_v32 = vmov 0   ;;  %s478_s16 = sand.u32 1, %s2319_s22  }
  0x88   : > { %1853 = vmatprep.subr.bf16.mxu1 %v2337_v0  ;;  %1869 = vmatprep.mubr.msk.bf16.mxu1 %vm2338_vm0, %v2337_v0  ;;  %v1991_v6 = vld [vmem:[#allocation5 + $0x8] sm:$0xff]   ;;  %v1983_v7 = vld [vmem:[#allocation2 + $0x20] sm:$0xff]   ;;  %v1995_v8 = vld [vmem:[#allocation5 + $0x10] sm:$0xff]   ;;  %s2604_s14 = scalar_select %p495_p7, %s2432_s25, 1 }
  0x89   : > { %1834 = vmatpush3.bf16.msra.mxu0 %v1979_v1  ;;  %1854 = vmatpush3.bf16.msra.mxu1 %v1987_v4  ;;  %v1984_v9 = vld [vmem:[#allocation2 + $0x28] sm:$0xff]   ;;  %v1999_v10 = vld [vmem:[#allocation5 + $0x18] sm:$0xff]   ;;  %v1985_v11 = vld [vmem:[#allocation2 + $0x30] sm:$0xff]   ;;  %s2625_s19 = sshll.u32 %s478_s16, 3  ;;  %s2679_s10 = sshll.u32 %s2432_s25, 7 }
  0x8a   : > { %1835 = vmatprep.subr.bf16.mxu0 %v2337_v0  ;;  %1855 = vmatprep.subr.bf16.mxu1 %v2337_v0  ;;  %s1675_s15 = sshll.u32 %s2604_s14, 2  ;;  %v1986_v12 = vld [vmem:[#allocation2 + $0x38] sm:$0xff]   ;;  %v1990_v13 = vld [vmem:[#allocation7 + $0x4] ss:$16 sps:$4 sm:$0xff]   ;;  %v1988_v15 = vld [vmem:[#allocation7] ss:$16 sps:$4 sm:$0xff]   ;;  %s2685_s30 = scalar_lea.hbm %s2814_s11, %s2679_s10 }
  0x8b   : > { %s498_s21 = scalar_lea.vmem %s2803_s0, %s1675_s15  ;;  %v1994_v16 = vld [vmem:[#allocation7 + $0x24] ss:$16 sps:$4 sm:$0xff]   ;;  %v1992_v17 = vld [vmem:[#allocation7 + $0x20] ss:$16 sps:$4 sm:$0xff]   ;;  %v2007_v25 = vld [vmem:[#allocation5 + $0x28] sm:$0xff]   ;;  %s494_s28 = scalar_lea.vmem [#allocation13], %s2625_s19 }
  0x8c   : > { %v504_v14 = vld [vmem:[%s498_s21] sm:$0xf]  ;;  %v1998_v18 = vld [vmem:[#allocation7 + $0x44] ss:$16 sps:$4 sm:$0xff]   ;;  %v2015_v33 = vld [vmem:[#allocation5 + $0x38] sm:$0xff]   ;;  %s487_s29 = scalar_lea.vmem [#allocation11], %s2625_s19 }
  0x8d   : > { %1836 = vmatpush3.bf16.msra.mxu0 %v1980_v2  ;;  %1856 = vmatpush3.bf16.msra.mxu1 %v1991_v6  ;;  %v1996_v19 = vld [vmem:[#allocation7 + $0x40] ss:$16 sps:$4 sm:$0xff]   ;;  %v2002_v20 = vld [vmem:[#allocation7 + $0x64] ss:$16 sps:$4 sm:$0xff]   ;;  %v2021_v35 = vld [vmem:[#allocation7 + $0xc] ss:$16 sps:$4 sm:$0xff]  }
  0x8e   : > { %1837 = vmatprep.subr.bf16.mxu0 %v2337_v0  ;;  %1857 = vmatprep.subr.bf16.mxu1 %v2337_v0  ;;  %v2000_v21 = vld [vmem:[#allocation7 + $0x60] ss:$16 sps:$4 sm:$0xff]   ;;  %v2006_v23 = vld [vmem:[#allocation7 + $0x84] ss:$16 sps:$4 sm:$0xff]   ;;  %v2019_v43 = vld [vmem:[#allocation7 + $0x8] ss:$16 sps:$4 sm:$0xff]  }
  0x8f   : > { %v2003_v22 = vld [vmem:[#allocation5 + $0x20] sm:$0xff]   ;;  %v2011_v28 = vld [vmem:[#allocation5 + $0x30] sm:$0xff]   ;;  %v2024_v45 = vld [vmem:[#allocation7 + $0x2c] ss:$16 sps:$4 sm:$0xff]   ;;  %s1676_s20 = sshll.u32 %s2604_s14, 3  ;;  %s1442_s14 = sand.u32 1, %s2432_s25  }
  0x90   : > { %v2004_v24 = vld [vmem:[#allocation7 + $0x80] ss:$16 sps:$4 sm:$0xff]   ;;  %v2010_v26 = vld [vmem:[#allocation7 + $0xa4] ss:$16 sps:$4 sm:$0xff]   ;;  %v2022_v46 = vld [vmem:[#allocation7 + $0x28] ss:$16 sps:$4 sm:$0xff]   ;;  %s502_s23 = scalar_lea.vmem %s2804_s1, %s1676_s20 }
  0x91   : > { %1838 = vmatpush3.bf16.msra.mxu0 %v1981_v3  ;;  %1858 = vmatpush3.bf16.msra.mxu1 %v1995_v8  ;;  %v2008_v27 = vld [vmem:[#allocation7 + $0xa0] ss:$16 sps:$4 sm:$0xff]   ;;  %v2014_v29 = vld [vmem:[#allocation7 + $0xc4] ss:$16 sps:$4 sm:$0xff]   ;;  %v2027_v47 = vld [vmem:[#allocation7 + $0x4c] ss:$16 sps:$4 sm:$0xff]  }
  0x92   : > { %1839 = vmatprep.subr.bf16.mxu0 %v2337_v0  ;;  %1859 = vmatprep.subr.bf16.mxu1 %v2337_v0  ;;  %v2012_v30 = vld [vmem:[#allocation7 + $0xc0] ss:$16 sps:$4 sm:$0xff]   ;;  %v2018_v31 = vld [vmem:[#allocation7 + $0xe4] ss:$16 sps:$4 sm:$0xff]   ;;  %v2025_v48 = vld [vmem:[#allocation7 + $0x48] ss:$16 sps:$4 sm:$0xff]  }
  0x93   : > { %v2016_v34 = vld [vmem:[#allocation7 + $0xe0] ss:$16 sps:$4 sm:$0xff]   ;;  %v2030_v49 = vld [vmem:[#allocation7 + $0x6c] ss:$16 sps:$4 sm:$0xff]   ;;  %v2028_v50 = vld [vmem:[#allocation7 + $0x68] ss:$16 sps:$4 sm:$0xff]  }
  0x94   : > { %v1677_v36 = vld [vmem:[%s2806_s3] ss:$0 sm:$0xff]  ;;  %v2033_v51 = vld [vmem:[#allocation7 + $0x8c] ss:$16 sps:$4 sm:$0xff]   ;;  %v2031_v52 = vld [vmem:[#allocation7 + $0x88] ss:$16 sps:$4 sm:$0xff]  }
  0x95   : > { %1840 = vmatpush3.bf16.msra.mxu0 %v1982_v5  ;;  %1860 = vmatpush3.bf16.msra.mxu1 %v1999_v10  ;;  %v2036_v53 = vld [vmem:[#allocation7 + $0xac] ss:$16 sps:$4 sm:$0xff]   ;;  %v2034_v54 = vld [vmem:[#allocation7 + $0xa8] ss:$16 sps:$4 sm:$0xff]   ;;  %v1686_v59 = vld [vmem:[%s2808_s5] ss:$0 sm:$0xff] }
  0x96   : > { %1841 = vmatprep.subr.bf16.mxu0 %v2337_v0  ;;  %1861 = vmatprep.subr.bf16.mxu1 %v2337_v0  ;;  %v2039_v55 = vld [vmem:[#allocation7 + $0xcc] ss:$16 sps:$4 sm:$0xff]   ;;  %v2037_v56 = vld [vmem:[#allocation7 + $0xc8] ss:$16 sps:$4 sm:$0xff]   ;;  %s1474_s26 = sshll.u32 %s487_s29, 4  ;;  %s2689_s17 = scalar_lea.sflag [#allocation12], %s1442_s14  ;;  %s1475_s26 = int_to_ptr.vmem [resolvable:$true] %s1474_s26 }
  0x97   : > { %v2042_v57 = vld [vmem:[#allocation7 + $0xec] ss:$16 sps:$4 sm:$0xff]   ;;  %v2040_v58 = vld [vmem:[#allocation7 + $0xe8] ss:$16 sps:$4 sm:$0xff]   ;;  %s2193_s20 = scalar_lea.vmem %s1475_s26, 128  ;;  %p2853_p11 = scmp.ne.s32.totalorder %s2838_s13, 0 }
  0x98   : > { %p2194_p8 = scmp.ne.s32.totalorder %s1475_s26, %s2193_s20  ;;  %s2343_s9 = smov [#allocation11]  }
  0x99   : > { %1842 = vmatpush3.bf16.msra.mxu0 %v1983_v7  ;;  %1862 = vmatpush3.bf16.msra.mxu1 %v2003_v22  ;;  %v2049_v22 = vld [vmem:[#allocation8 + $0x50] sm:$0xff]   ;;  %s2197_s27 = sshll.u32 %s2343_s9, 4  ;;  %s2198_s27 = int_to_ptr.vmem [resolvable:$false] %s2197_s27 }
  0x9a   : > { %1843 = vmatprep.subr.bf16.mxu0 %v2337_v0  ;;  %1863 = vmatprep.subr.bf16.mxu1 %v2337_v0  ;;  %p2195_p13 = pnand %p2194_p8, %p2853_p11  ;;  %s2199_s25 = scalar_lea.vmem %s2198_s27, 256 }
  0x9b   : > { %p2200_p6 = scmp.lt.s32.totalorder %s1475_s26, %s2198_s27  ;;  %p2201_p9 = scmp.lt.s32.totalorder %s2199_s25, %s2193_s20 }
  0x9c   : > { %p2196_p1 = pneg %p2195_p13 }
  0x9d   : > { %1844 = vmatpush3.bf16.msra.mxu0 %v1984_v9  ;;  %1864 = vmatpush3.bf16.msra.mxu1 %v2007_v25  ;;  %v2050_v25 = vld [vmem:[#allocation8 + $0x10] sm:$0xff]   ;;  %p2202_p5 = por %p2201_p9, %p2200_p6 }
  0x9e   : > { %1845 = vmatprep.subr.bf16.mxu0 %v2337_v0  ;;  %1865 = vmatprep.subr.bf16.mxu1 %v2337_v0 }
  0x9f   : > { %p2203_p0 = pnand %p2202_p5, %p2196_p1 }
  0xa1   : > { %1846 = vmatpush3.bf16.msra.mxu0 %v1985_v11  ;;  %1866 = vmatpush3.bf16.msra.mxu1 %v2011_v28  ;;  %v2059_v28 = vld [vmem:[#allocation8 + $0xd8] sm:$0xff]  }
  0xa2   : > { %1847 = vmatprep.subr.bf16.mxu0 %v2337_v0  ;;  %1867 = vmatprep.subr.bf16.mxu1 %v2337_v0 }
  0xa5   : > { %1848 = vmatpush3.bf16.msra.mxu0 %v1986_v12  ;;  %1868 = vmatpush3.bf16.msra.mxu1 %v2015_v33  ;;  %v2063_v33 = vld [vmem:[#allocation8 + $0xe0] sm:$0xff]  }
  0xa6   : > { %954 = vmatprep.subr.bf16.mxu0 %v1990_v13  ;;  %995 = vmatprep.subr.bf16.mxu1 %v2021_v35  ;;  %v2340_v13 = vmov 3   ;;  %v2061_v35 = vld [vmem:[#allocation8 + $0x68] sm:$0xff]  }
  0xa7   : > { %1975 = vset.pattern.permute.xlu0 %v2340_v13 }
  0xa8   : > { %1850 = vmatmul.mubr.bf16.vlgmr.msra.gmra.mrb[0].mxu0 %v504_v14  ;;  %v2341_v14 = vmov 1  }
  0xa9   : > { %955 = vmatpush1.bf16.msra.mxu0 %v1988_v15  ;;  %986 = vmatprep.mubr.bf16.mxu0 %v2339_v32  ;;  %v2043_v15 = vld [vmem:[#allocation8 + $0x40] sm:$0xff]  }
  0xaa   : > { %956 = vmatprep.subr.bf16.mxu0 %v1994_v16  ;;  %1973 = vset.pattern.permute.xlu1 %v2341_v14  ;;  %v2044_v16 = vld [vmem:[#allocation8] sm:$0xff]  }
  0xad   : > { %957 = vmatpush1.bf16.msra.mxu0 %v1992_v17  ;;  %v2045_v17 = vld [vmem:[#allocation8 + $0x48] sm:$0xff]  }
  0xae   : > { %958 = vmatprep.subr.bf16.mxu0 %v1998_v18  ;;  %v2047_v18 = vld [vmem:[#allocation8 + $0xc0] sm:$0xff]  }
  0xb1   : > { %959 = vmatpush1.bf16.msra.mxu0 %v1996_v19  ;;  %v2048_v19 = vld [vmem:[#allocation8 + $0x80] sm:$0xff]  }
  0xb2   : > { %960 = vmatprep.subr.bf16.mxu0 %v2002_v20  ;;  %v2051_v20 = vld [vmem:[#allocation8 + $0xc8] sm:$0xff]  }
  0xb5   : > { %961 = vmatpush1.bf16.msra.mxu0 %v2000_v21  ;;  %v2046_v21 = vld [vmem:[#allocation8 + $0x8] sm:$0xff]  }
  0xb6   : > { %962 = vmatprep.subr.bf16.mxu0 %v2006_v23  ;;  %v2052_v23 = vld [vmem:[#allocation8 + $0x88] sm:$0xff]  }
  0xb9   : > { %963 = vmatpush1.bf16.msra.mxu0 %v2004_v24  ;;  %v2055_v24 = vld [vmem:[#allocation8 + $0xd0] sm:$0xff]  }
  0xba   : > { %964 = vmatprep.subr.bf16.mxu0 %v2010_v26  ;;  %v2053_v26 = vld [vmem:[#allocation8 + $0x58] sm:$0xff]  }
  0xbd   : > { %965 = vmatpush1.bf16.msra.mxu0 %v2008_v27  ;;  %v2056_v27 = vld [vmem:[#allocation8 + $0x90] sm:$0xff]  }
  0xbe   : > { %966 = vmatprep.subr.bf16.mxu0 %v2014_v29  ;;  %v2054_v29 = vld [vmem:[#allocation8 + $0x18] sm:$0xff]  }
  0xc1   : > { %967 = vmatpush1.bf16.msra.mxu0 %v2012_v30  ;;  %v2057_v30 = vld [vmem:[#allocation8 + $0x60] sm:$0xff]  }
  0xc2   : > { %968 = vmatprep.subr.bf16.mxu0 %v2018_v31  ;;  %v2060_v31 = vld [vmem:[#allocation8 + $0x98] sm:$0xff]  }
  0xc5   : > { %969 = vmatpush1.bf16.msra.mxu0 %v2016_v34  ;;  %v2058_v34 = vld [vmem:[#allocation8 + $0x20] sm:$0xff]  }
  0xc6   : > { %1789 = vmatprep.subr.bf16.mxu0 %v2043_v15 }
 0x17b   : > { %v610_v37 = vpop.f32.mrb[0].mxu0 }
 0x17c   : > { %v611_v38 = vadd.f32 %v1677_v36, %v610_v37  ;;  %v1851_v39 = vpop.f32.mrb[1].mxu0  ;;  %v2064_v36 = vld [vmem:[#allocation8 + $0xa0] sm:$0xff]   ;;  %v2062_v37 = vld [vmem:[#allocation8 + $0x28] sm:$0xff]  }
 0x17d   : > { %v613_v40 = vpop.f32.mrb[2].mxu0 }
 0x17e   : > { %2075 = vtanh.f32 %v611_v38  ;;  %v1852_v41 = vpop.f32.mrb[3].mxu0 }
 0x17f   : > { %v2065_v41 = vld [vmem:[#allocation8 + $0x70] sm:$0xff]  }
 0x188   : > { %v2627_v42 = vpop.eup %2075 }
 0x189   : > { %v618_v44 = vpack.c.bf16 %v2627_v42, %v2627_v42  ;;  %617 = vst [vmem:[%s494_s28] sm:$0xff] %v2627_v42 }
 0x18b   : > { %1870 = vmatmul.mubr.bf16.vlgmr.msra.gmra.mrb[0].mxu1 %v618_v44  ;;  %987 = vmatmul.mubr.bf16.vlgmr.msra.gmra.mrb[4].mxu0 %v618_v44 }
 0x18c   : > { %996 = vmatpush1.bf16.msra.mxu1 %v2019_v43  ;;  %1027 = vmatprep.mubr.bf16.mxu1 %v2339_v32  ;;  %v2066_v43 = vld [vmem:[#allocation8 + $0x30] sm:$0xff]  }
 0x18d   : > { %997 = vmatprep.subr.bf16.mxu1 %v2024_v45  ;;  %1790 = vmatpush3.bf16.msra.mxu0 %v2044_v16  ;;  %v2068_v45 = vld [vmem:[#allocation8 + $0xa8] sm:$0xff]  }
 0x18e   : > { %1791 = vmatprep.subr.bf16.mxu0 %v2045_v17 }
 0x190   : > { %998 = vmatpush1.bf16.msra.mxu1 %v2022_v46  ;;  %v2069_v46 = vld [vmem:[#allocation8 + $0x78] sm:$0xff]  }
 0x191   : > { %999 = vmatprep.subr.bf16.mxu1 %v2027_v47  ;;  %1792 = vmatpush3.bf16.msra.mxu0 %v2046_v21  ;;  %v2070_v47 = vld [vmem:[#allocation8 + $0x38] sm:$0xff]  }
 0x192   : > { %1793 = vmatprep.subr.bf16.mxu0 %v2049_v22 }
 0x194   : > { %1000 = vmatpush1.bf16.msra.mxu1 %v2025_v48  ;;  %v2071_v48 = vld [vmem:[#allocation8 + $0xf0] sm:$0xff]  }
 0x195   : > { %1001 = vmatprep.subr.bf16.mxu1 %v2030_v49  ;;  %1794 = vmatpush3.bf16.msra.mxu0 %v2050_v25  ;;  %v2072_v49 = vld [vmem:[#allocation8 + $0xb0] sm:$0xff]  }
 0x196   : > { %1795 = vmatprep.subr.bf16.mxu0 %v2053_v26 }
 0x198   : > { %1002 = vmatpush1.bf16.msra.mxu1 %v2028_v50  ;;  %v2342_v50 = vmov 2  }
 0x199   : > { %1003 = vmatprep.subr.bf16.mxu1 %v2033_v51  ;;  %1796 = vmatpush3.bf16.msra.mxu0 %v2054_v29  ;;  %v2073_v51 = vld [vmem:[#allocation8 + $0xf8] sm:$0xff]  }
 0x19a   : > { %1797 = vmatprep.subr.bf16.mxu0 %v2057_v30 }
 0x19c   : > { %1004 = vmatpush1.bf16.msra.mxu1 %v2031_v52  ;;  %v2074_v52 = vld [vmem:[#allocation8 + $0xb8] sm:$0xff]  }
 0x19d   : > { %1005 = vmatprep.subr.bf16.mxu1 %v2036_v53  ;;  %1798 = vmatpush3.bf16.msra.mxu0 %v2058_v34  ;;  %v1428_v53 = vld [vmem:[%s502_s23] sm:$0xff] }
 0x19e   : > { %1799 = vmatprep.subr.bf16.mxu0 %v2061_v35  ;;  %vm1429_vm1 = vcmp.gt.f32.partialorder %v1428_v53, 0.0 }
 0x1a0   : > { %1006 = vmatpush1.bf16.msra.mxu1 %v2034_v54  ;;  %v1430_v54 = vsel %vm1429_vm1, 1, %v2339_v32 }
 0x1a1   : > { %1007 = vmatprep.subr.bf16.mxu1 %v2039_v55  ;;  %1800 = vmatpush3.bf16.msra.mxu0 %v2062_v37  ;;  %v774_v55 = vlaneseq }
 0x1a2   : > { %1801 = vmatprep.subr.bf16.mxu0 %v2065_v41 }
 0x1a4   : > { %1008 = vmatpush1.bf16.msra.mxu1 %v2037_v56  ;;  %v775_v56 = vshrl.u32 %v774_v55, 7 }
 0x1a5   : > { %1009 = vmatprep.subr.bf16.mxu1 %v2042_v57  ;;  %1802 = vmatpush3.bf16.msra.mxu0 %v2066_v43 }
 0x1a6   : > { %1803 = vmatprep.subr.bf16.mxu0 %v2069_v46  ;;  %v780_v57 = vsub.s32 1, %v775_v56 }
 0x1a8   : > { %1010 = vmatpush1.bf16.msra.mxu1 %v2040_v58  ;;  %v788_v58 = vsub.s32 3, %v775_v56 }
 0x1a9   : > { %1811 = vmatprep.subr.bf16.mxu1 %v2047_v18  ;;  %1804 = vmatpush3.bf16.msra.mxu0 %v2070_v47 }
 0x1ab   : > { %1028 = vmatmul.mubr.bf16.vlgmr.msra.gmra.mrb[4].mxu1 %v618_v44  ;;  %v2067_v44 = vld [vmem:[#allocation8 + $0xe8] sm:$0xff]  }
 0x1ac   : > { %1812 = vmatpush3.bf16.msra.mxu1 %v2048_v19 }
 0x1ad   : > { %1813 = vmatprep.subr.bf16.mxu1 %v2051_v20 }
 0x1b0   : > { %1814 = vmatpush3.bf16.msra.mxu1 %v2052_v23 }
 0x1b1   : > { %1815 = vmatprep.subr.bf16.mxu1 %v2055_v24 }
 0x1b4   : > { %1816 = vmatpush3.bf16.msra.mxu1 %v2056_v27 }
 0x1b5   : > { %1817 = vmatprep.subr.bf16.mxu1 %v2059_v28 }
 0x1b8   : > { %1818 = vmatpush3.bf16.msra.mxu1 %v2060_v31 }
 0x1b9   : > { %1819 = vmatprep.subr.bf16.mxu1 %v2063_v33 }
 0x1bc   : > { %1820 = vmatpush3.bf16.msra.mxu1 %v2064_v36 }
 0x1bd   : > { %1821 = vmatprep.subr.bf16.mxu1 %v2067_v44 }
 0x1c0   : > { %1822 = vmatpush3.bf16.msra.mxu1 %v2068_v45 }
 0x1c1   : > { %1823 = vmatprep.subr.bf16.mxu1 %v2071_v48 }
 0x1c4   : > { %1824 = vmatpush3.bf16.msra.mxu1 %v2072_v49 }
 0x1c5   : > { %1825 = vmatprep.subr.bf16.mxu1 %v2073_v51 }
 0x1c8   : > { %1826 = vmatpush3.bf16.msra.mxu1 %v2074_v52 }
 0x25e   : > { %v724_v60 = vpop.f32.mrb[0].mxu1  ;;  %v2639_v61 = vpop.f32.mrb[4].mxu0 }
 0x25f   : > { %v725_v62 = vadd.f32 %v1686_v59, %v724_v60  ;;  %v1871_v63 = vpop.f32.mrb[1].mxu1  ;;  %v2641_v0 = vpop.f32.mrb[5].mxu0  ;;  %v772_v59 = vld [vmem:[%s2810_s7] sm:$0xf] }
 0x260   : > { %v727_v1 = vpop.f32.mrb[2].mxu1  ;;  %v992_v2 = vpop.f32.mrb[6].mxu0  ;;  %v781_v60 = vrot.slane %v772_v59, %v780_v57  ;;  %v776_v63 = vsub.s32 0, %v775_v56 }
 0x261   : > { %730 = vmax.xlane.f32.xlu0 %v725_v62  ;;  %v1872_v3 = vpop.f32.mrb[3].mxu1  ;;  %v993_v4 = vpop.f32.mrb[7].mxu0 }
 0x262   : > { %v991_v1 = vadd.f32 %v2641_v0, %v781_v60  ;;  %v777_v3 = vrot.slane %v772_v59, %v776_v63  ;;  %v784_v4 = vsub.s32 2, %v775_v56 }
 0x27e   : > { %v2643_v5 = vpop.f32.mrb[4].mxu1 }
 0x27f   : > { %v2645_v6 = vpop.f32.mrb[5].mxu1 }
 0x280   : > { %v1033_v7 = vpop.f32.mrb[6].mxu1 }
 0x281   : > { %v1034_v8 = vpop.f32.mrb[7].mxu1  ;;  %v1037_v7 = vmax.f32 %v991_v1, 0.0 }
 0x282   : > { %v989_v8 = vadd.f32 %v2639_v61, %v777_v3 }
 0x2ee   : > { %v731_v9 = vpop.xlane.xlu0 %730 }
 0x2ef   : > { %v732_v10 = vsub.f32 %v725_v62, %v731_v9  ;;  %v789_v62 = vrot.slane %v772_v59, %v788_v58 }
 0x2f1   : > { %v733_v11 = vmul.f32 1.442695, %v732_v10  ;;  %v1032_v2 = vadd.f32 %v2645_v6, %v789_v62  ;;  %v1036_v6 = vmax.f32 %v989_v8, 0.0 }
 0x2f3   : > { %2077 = vpow2.f32 %v733_v11  ;;  %v785_v11 = vrot.slane %v772_v59, %v784_v4 }
 0x2f5   : > { %v1030_v15 = vadd.f32 %v2643_v5, %v785_v11 }
 0x2f7   : > { %v1038_v18 = vmax.f32 %v1030_v15, 0.0 }
 0x2fd   : > { %v2078_v12 = vpop.eup %2077 }
 0x2fe   : > { %735 = vadd.xlane.f32.xlu0 %v2078_v12 }
 0x38b   : > { %v736_v38 = vpop.xlane.xlu0 %735 }
 0x38c   : > { %2079 = vrcp.f32 %v736_v38 }
 0x396   : > { %v2080_v39 = vpop.eup %2079 }
 0x397   : > { %v738_v40 = vmul.f32 %v2080_v39, %v2078_v12 }
 0x399   : > { %1057 = vperm.xlu0 %1975, %v738_v40   ;;  %1047 = vperm.xlu1 %1973, %v738_v40   ;;  %739 = vst [vmem:[%s487_s29] sm:$0xff] %v738_v40 }
 0x39d   : > { %1974 = vset.pattern.permute.xlu1 %v2339_v32  ;;  %1978 = vset.pattern.permute.xlu0 %v2339_v32 }
 0x39e   : > { %1042 = vperm.xlu1 %1974, %v738_v40  }
 0x3a2   : > { %1976 = vset.pattern.permute.xlu1 %v2342_v50 }
 0x3a3   : > { %1052 = vperm.xlu1 %1976, %v738_v40  }
 0x3a7   : > { %1977 = vset.pattern.permute.xlu1 %v2339_v32  ;;  %v1039_v32 = vmax.f32 %v1032_v2, 0.0 }
 0x3a8   : > { %1432 = vperm.xlu1 %1977, %v1430_v54  }
 0x418   : > { %v2664_v9 = vpop.permute.xlu0 %1057  ;;  %v2666_v10 = vpop.permute.xlu1 %1047 }
 0x419   : > { %v1060_v12 = vmul.f32 %v2664_v9, %v1039_v32  ;;  %v1050_v13 = vmul.f32 %v2666_v10, %v1037_v7 }
 0x41b   : > { %v1064_v14 = vpack.c.bf16 %v1060_v12, %v1060_v12  ;;  %v1062_v0 = vpack.c.bf16 %v1050_v13, %v1050_v13 }
 0x41d   : > { %v2671_v16 = vpop.permute.xlu1 %1042  ;;  %1359 = vmatprep.mubr.bf16.mxu0 %v1062_v0  ;;  %1399 = vmatprep.mubr.bf16.mxu1 %v1064_v14 }
 0x41e   : > { %v1045_v61 = vmul.f32 %v2671_v16, %v1036_v6 }
 0x420   : > { %v1061_v17 = vpack.c.bf16 %v1045_v61, %v1045_v61 }
 0x422   : > { %v2674_v19 = vpop.permute.xlu1 %1052  ;;  %1360 = vmatmul.mubr.bf16.vlgmr.msra.gmra.mrb[8].mxu0 %v1061_v17 }
 0x423   : > { %v1055_v20 = vmul.f32 %v2674_v19, %v1038_v18 }
 0x425   : > { %v1063_v21 = vpack.c.bf16 %v1055_v20, %v1055_v20 }
 0x427   : > { %1400 = vmatmul.mubr.bf16.vlgmr.msra.gmra.mrb[8].mxu1 %v1063_v21 }
 0x428   : > { %2206 = shalt.err (!%p2203_p0)
}
 0x429   : > { %s2207_s29 = scalar_lea.hbm %s2685_s30, 128  ;;  %s2211_s18 = scalar_lea.hbm %s2814_s11, 256 }
 0x42a   : > { %p2208_p10 = scmp.ne.s32.totalorder %s2685_s30, %s2207_s29  ;;  %p2212_p4 = scmp.lt.u32.totalorder %s2685_s30, %s2814_s11 }
 0x42b   : > { %p2213_p12 = scmp.lt.u32.totalorder %s2211_s18, %s2207_s29  ;;  %p2215_p8 = scmp.lt.u32.totalorder %s2207_s29, %s2685_s30 }
 0x42c   : > { %p2209_p2 = pnand %p2208_p10, %p2853_p11 }
 0x42d   : > { %p2214_p7 = por %p2213_p12, %p2212_p4 }
 0x42e   : > { %p2210_p3 = pneg %p2209_p2 }
 0x42f   : > { %p2216_p13 = por %p2215_p8, %p2214_p7 }
 0x431   : > { %p2217_p1 = pnand %p2216_p13, %p2210_p3 }
 0x433   : > { %2220 = shalt.err (!%p2217_p1)
}
 0x434   : > { %1890 = dma.vmem_to_hbm [thread:$0]  (%p2853_p11), %s1475_s26, 128, %s2685_s30, %s2689_s17  }
 0x435   : > { %s2713_s9 = scalar_lea.hbm %s2815_s12, %s2679_s10  ;;  %s1487_s27 = sshll.u32 %s494_s28, 4  ;;  %s1488_s27 = int_to_ptr.vmem [resolvable:$true] %s1487_s27 }
 0x436   : > { %s2221_s25 = scalar_lea.vmem %s1488_s27, 128  ;;  %s2344_s29 = smov [#allocation13]  }
 0x437   : > { %p2222_p6 = scmp.ne.s32.totalorder %s1488_s27, %s2221_s25  ;;  %s2225_s23 = sshll.u32 %s2344_s29, 4  ;;  %s2226_s23 = int_to_ptr.vmem [resolvable:$false] %s2225_s23 }
 0x438   : > { %s2227_s15 = scalar_lea.vmem %s2226_s23, 256  ;;  %p2228_p0 = scmp.lt.s32.totalorder %s1488_s27, %s2226_s23 }
 0x439   : > { %p2223_p9 = pnand %p2222_p6, %p2853_p11  ;;  %p2229_p10 = scmp.lt.s32.totalorder %s2227_s15, %s2221_s25 }
 0x43b   : > { %p2224_p5 = pneg %p2223_p9  ;;  %p2230_p2 = por %p2229_p10, %p2228_p0 }
 0x43d   : > { %p2231_p3 = pnand %p2230_p2, %p2224_p5 }
 0x43f   : > { %2234 = shalt.err (!%p2231_p3)
}
 0x440   : > { %s2235_s28 = scalar_lea.hbm %s2713_s9, 128  ;;  %s2239_s18 = scalar_lea.hbm %s2815_s12, 256 }
 0x441   : > { %p2236_p4 = scmp.ne.s32.totalorder %s2713_s9, %s2235_s28  ;;  %p2240_p8 = scmp.lt.u32.totalorder %s2713_s9, %s2815_s12 }
 0x442   : > { %p2241_p13 = scmp.lt.u32.totalorder %s2239_s18, %s2235_s28  ;;  %p2243_p6 = scmp.lt.u32.totalorder %s2235_s28, %s2713_s9 }
 0x443   : > { %p2237_p12 = pnand %p2236_p4, %p2853_p11 }
 0x444   : > { %p2242_p1 = por %p2241_p13, %p2240_p8 }
 0x445   : > { %p2238_p7 = pneg %p2237_p12 }
 0x446   : > { %p2244_p9 = por %p2243_p6, %p2242_p1 }
 0x448   : > { %p2245_p5 = pnand %p2244_p9, %p2238_p7 }
 0x44a   : > { %2248 = shalt.err (!%p2245_p5)
}
 0x44b   : > { %1891 = dma.vmem_to_hbm [thread:$0]  (%p2853_p11), %s1488_s27, 128, %s2713_s9, %s2689_s17   ;;  %v1433_v43 = vpop.permute.xlu1 %1432 }
 0x44c   : > { %s2854_s25 = sld [smem:[#allocation25_spill]]  ;;  %s480_s28 = scalar_lea.vmem [#allocation10], %s2625_s19  ;;  %vm1434_vm2 = vcmp.eq.s32.totalorder %v1433_v43, 1 }
 0x44d   : > { %s1461_s30 = sshll.u32 %s480_s28, 4  ;;  %s2855_s14 = sld [smem:[#allocation26_spill]]  ;;  %s2758_s30 = int_to_ptr.vmem [resolvable:$true] %s1461_s30 }
 0x44e   : > { %s1438_s24 = scalar_lea.sflag [#allocation4], %s478_s16  ;;  %s2249_s20 = scalar_lea.vmem %s2758_s30, 128 }
 0x44f   : > { %p2250_p0 = scmp.ne.s32.totalorder %s2758_s30, %s2249_s20  ;;  %s2345_s19 = smov [#allocation10]  }
 0x450   : > { %s2253_s29 = sshll.u32 %s2345_s19, 4  ;;  %s2254_s29 = int_to_ptr.vmem [resolvable:$false] %s2253_s29 }
 0x451   : > { %p2251_p10 = pnand %p2250_p0, %p2853_p11  ;;  %p2256_p3 = scmp.lt.s32.totalorder %s2758_s30, %s2254_s29 }
 0x452   : > { %v1727_v5 = vld [vmem:[%s2854_s25] ss:$0 sm:$0xff]  ;;  %v1760_v30 = vld [vmem:[%s2854_s25 + $0x1] ss:$0 sm:$0xff]  ;;  %v1761_v35 = vld [vmem:[%s2854_s25 + $0x2] ss:$0 sm:$0xff] }
 0x453   : > { %v1134_v24 = vmul.f32 %v1727_v5, %v2671_v16  ;;  %v1412_v37 = vmul.f32 %v1760_v30, %v2666_v10  ;;  %v1762_v39 = vld [vmem:[%s2854_s25 + $0x3] ss:$0 sm:$0xff]  ;;  %v1419_v40 = vmul.f32 %v1761_v35, %v2674_v19  ;;  %s2756_s21 = scalar_lea.hbm %s2855_s14, %s2679_s10  ;;  %p2252_p2 = pneg %p2251_p10 }
 0x454   : > { %v1426_v44 = vmul.f32 %v1762_v39, %v2664_v9  ;;  %s2255_s10 = scalar_lea.vmem %s2254_s29, 256 }
 0x455   : > { %p2257_p4 = scmp.lt.s32.totalorder %s2255_s10, %s2249_s20 }
 0x457   : > { %p2258_p12 = por %p2257_p4, %p2256_p3 }
 0x459   : > { %p2259_p7 = pnand %p2258_p12, %p2252_p2 }
 0x4f5   : > { %v1805_v22 = vpop.f32.mrb[8].mxu0 }
 0x4f6   : > { %v1806_v23 = vpop.f32.mrb[9].mxu0 }
 0x4f7   : > { %v1807_v25 = vadd.f32 %v1806_v23, %v1805_v22  ;;  %v1808_v26 = vpop.f32.mrb[10].mxu0 }
 0x4f8   : > { %v1809_v27 = vpop.f32.mrb[11].mxu0 }
 0x4f9   : > { %v1362_v28 = vadd.f32 %v1807_v25, %v1134_v24 }
 0x4fa   : > { %v1827_v29 = vpop.f32.mrb[8].mxu1 }
 0x4fb   : > { %v1828_v31 = vpop.f32.mrb[9].mxu1 }
 0x4fc   : > { %v1829_v33 = vadd.f32 %v1828_v31, %v1827_v29  ;;  %v1830_v34 = vpop.f32.mrb[10].mxu1 }
 0x4fd   : > { %v1831_v36 = vpop.f32.mrb[11].mxu1 }
 0x4fe   : > { %v1402_v38 = vadd.f32 %v1829_v33, %v1362_v28 }
 0x500   : > { %v1413_v41 = vadd.f32 %v1412_v37, %v1402_v38 }
 0x502   : > { %v1420_v45 = vadd.f32 %v1419_v40, %v1413_v41 }
 0x504   : > { %v1427_v46 = vadd.f32 %v1426_v44, %v1420_v45 }
 0x506   : > { %v1435_v47 = vsel %vm1434_vm2, %v1427_v46, %v2627_v42 }
 0x507   : > { %1436 = vst [vmem:[%s480_s28] sm:$0xff] %v1435_v47 }
 0x508   : > { %2262 = shalt.err (!%p2259_p7)
}
 0x509   : > { %s2263_s16 = scalar_lea.hbm %s2756_s21, 128  ;;  %s2267_s9 = scalar_lea.hbm %s2855_s14, 256 }
 0x50a   : > { %p2264_p8 = scmp.ne.s32.totalorder %s2756_s21, %s2263_s16  ;;  %p2268_p6 = scmp.lt.u32.totalorder %s2756_s21, %s2855_s14 }
 0x50b   : > { %p2269_p9 = scmp.lt.u32.totalorder %s2267_s9, %s2263_s16  ;;  %p2271_p0 = scmp.lt.u32.totalorder %s2263_s16, %s2756_s21 }
 0x50c   : > { %p2265_p13 = pnand %p2264_p8, %p2853_p11 }
 0x50d   : > { %p2270_p5 = por %p2269_p9, %p2268_p6 }
 0x50e   : > { %p2266_p1 = pneg %p2265_p13 }
 0x50f   : > { %p2272_p10 = por %p2271_p0, %p2270_p5 }
 0x511   : > { %p2273_p2 = pnand %p2272_p10, %p2266_p1 }
 0x513   : > { %2276 = shalt.err (!%p2273_p2)
}
 0x514   : > { %1889 = dma.vmem_to_hbm [thread:$0]  (%p2853_p11), %s2758_s30, 128, %s2756_s21, %s1438_s24  }
 0x515 PF: > { %s2856_s28 = sld [smem:[#allocation21_spill]]  ;;  %s2857_s26 = sld [smem:[#allocation19_spill]] }
 0x516   : > { %s2858_s18 = sld [smem:[#allocation24_spill]] }
 0x51b   : > { %p1926_p3 = scmp.ge.s32.totalorder %s2856_s28, 2  ;;  %s1499_s20 = sand.u32 1, %s2857_s26  }
 0x51c   : > { %p2859_p4 = scmp.ne.s32.totalorder %s2858_s18, 0  ;;  %s1500_s19 = scalar_lea.sflag [#allocation4], %s1499_s20 }
 0x51e   : > { %p1909_p12 = pnand %p1926_p3, %p2859_p4 }
 0x520   : > { %2306 = dma.done.wait (!%p1909_p12), %s1500_s19, 128  }
 0x521   : > { %2308 = vsyncadd (!%p1909_p12), %s1500_s19, 4294967168  ;;  %s2860_s29 = sadd.s32 4294967294, %s2856_s28  }
 0x522   : > { %s1508_s10 = sand.u32 1, %s2860_s29  }
 0x523   : > { %s1509_s16 = scalar_lea.sflag [#allocation12], %s1508_s10 }
 0x524   : > { %2310 = dma.done.wait (!%p1909_p12), %s1509_s16, 256  }
 0x525   : > { %2312 = vsyncadd (!%p1909_p12), %s1509_s16, 4294967040  ;;  %s2861_s24 = sld [smem:[#allocation22_spill]]  ;;  %s2862_s13 = sld [smem:[#allocation20_spill]] }
 0x526   : > { %s2863_s23 = sld [smem:[#allocation23_spill]]  ;;  %s2864_s21 = smov %s2319_s22 }
 0x52b   : > { %p29_p11 = scmp.ge.s32.totalorder %s2861_s24, 4   ;;  %s2865_s22 = smov %s2862_s13 }
 0x52d   :  { %31 = sbr.rel (!%p29_p11) target bundleno = 11 (0xb), region = 147 }
 0x534   :  { %1523 = vsyncpa [#allocation3], 1 }
 0x535   :  { %1525 = vsyncpa [#allocation3 + $0x1], 1 }
 0x536   :  { %1526 = vsyncpa [#allocation6], 1 }
 0x537   :  { %1527 = vsyncpa [#allocation9], 1 }
 0x538   :  { %1528 = vsyncpa [#allocation4], 1 }
 0x539   :  { %1530 = vsyncpa [#allocation4 + $0x1], 1 }
 0x53a   :  { %1531 = vsyncpa [#allocation12], 1 }
 0x53b   :  { %1533 = vsyncpa [#allocation12 + $0x1], 1 }

</bundles_post_ra>
